<compile_context>
chip_gen: v7x
topology: tpu7x:2x2x1
jax: 0.10.0
libtpu: 0.0.40
codegen_flags: <defaults>
</compile_context>

<pallas_src>
import jax
import jax.numpy as jnp
from jax.experimental import pallas as pl
from jax.experimental.pallas import tpu as pltpu


def _round_up(x, m):
    return ((x + m - 1) // m) * m


def _cdiv(a, b):
    return (a + b - 1) // b


def _linear_kernel_accum_out(x_ref, w_ref, b_ref, o_ref):
    """f32 output: accumulate directly into the VMEM-resident output block."""
    k = pl.program_id(2)

    @pl.when(k == 0)
    def _():
        o_ref[...] = jnp.zeros_like(o_ref)

    o_ref[...] += jnp.dot(
        x_ref[...], w_ref[...], preferred_element_type=jnp.float32
    )

    # Bias is added exactly once, fused into the last reduction step.
    @pl.when(k == pl.num_programs(2) - 1)
    def _():
        o_ref[...] += b_ref[...].astype(jnp.float32)


def _linear_kernel_scratch(x_ref, w_ref, b_ref, o_ref, acc_ref):
    """Low-precision output: f32 VMEM scratch accumulator, single cast at the end."""
    k = pl.program_id(2)

    @pl.when(k == 0)
    def _():
        acc_ref[...] = jnp.zeros_like(acc_ref)

    acc_ref[...] += jnp.dot(
        x_ref[...], w_ref[...], preferred_element_type=jnp.float32
    )

    @pl.when(k == pl.num_programs(2) - 1)
    def _():
        o_ref[...] = (acc_ref[...] + b_ref[...].astype(jnp.float32)).astype(
            o_ref.dtype
        )


def ffn_forward(x, w1, b1, *, compute_dtype=None):
    """Equivalent of FFN.forward: linear1(x) = x @ w1 + b1.

    x  : (..., input_dim)
    w1 : (input_dim, hidden_dim)   (transposed vs torch's (hidden, input))
    b1 : (hidden_dim,)
    compute_dtype : optionally jnp.bfloat16 to feed the MXU bf16 operands
                    (f32 accumulation preserved). Default keeps x/w1 dtypes.
    """
    in_dim = x.shape[-1]
    hidden_dim = w1.shape[1]
    lead = x.shape[:-1]
    m = 1
    for d in lead:
        m *= d

    out_dtype = x.dtype

    x2d = x.reshape(m, in_dim)
    w2d = w1
    b2d = b1.reshape(1, hidden_dim)

    if compute_dtype is not None and jnp.dtype(compute_dtype) != x2d.dtype:
        x2d = x2d.astype(compute_dtype)
        w2d = w2d.astype(compute_dtype)

    op_itemsize = jnp.dtype(x2d.dtype).itemsize
    out_itemsize = jnp.dtype(out_dtype).itemsize
    b_itemsize = jnp.dtype(b2d.dtype).itemsize

    # ---- tile selection: lane-dense, MXU-friendly, VMEM-aware ----
    sub = 16 if op_itemsize == 2 else 8          # sublane tile (bf16 packs 16)
    m_al = _round_up(max(m, 1), sub)
    k_al = _round_up(in_dim, 128)
    h_al = _round_up(hidden_dim, 128)

    tm = min(512, m_al)
    tn = min(1024, h_al)
    tk = min(1024, k_al)

    grid_m = _cdiv(m, tm)
    grid_h = _cdiv(hidden_dim, tn)

    # v7x has 2 TensorCores: if the M axis collapses to one block, split H so a
    # parallel axis of extent >= 2 exists (no effect on single-TC v5e/v6e).
    if grid_m == 1 and grid_h == 1 and h_al >= 256:
        tn = _round_up(_cdiv(h_al, 2), 128)
        grid_h = _cdiv(hidden_dim, tn)

    # K (contraction) must be zero-padded when it doesn't divide tk: Pallas
    # masks only partial OUTPUT blocks, never partial input reads.
    k_pad = _round_up(in_dim, tk)
    if k_pad != in_dim:
        x2d = jnp.pad(x2d, ((0, 0), (0, k_pad - in_dim)))
        w2d = jnp.pad(w2d, ((0, k_pad - in_dim), (0, 0)))
    grid_k = k_pad // tk

    grid = (grid_m, grid_h, grid_k)

    # ---- kernel / scratch selection ----
    if jnp.dtype(out_dtype) == jnp.float32:
        kernel = _linear_kernel_accum_out
        scratch_shapes = []
        scratch_bytes = 0
    else:
        kernel = _linear_kernel_scratch
        scratch_shapes = [pltpu.VMEM((tm, tn), jnp.float32)]
        scratch_bytes = tm * tn * 4

    # ---- VMEM budget (double-buffered inputs/output + scratch), v7x-safe ----
    vmem_need = (
        2 * tm * tk * op_itemsize
        + 2 * tk * tn * op_itemsize
        + 2 * tn * b_itemsize
        + 2 * tm * tn * out_itemsize
        + scratch_bytes
    )
    vmem_limit = min(48 * 1024 * 1024,
                     max(32 * 1024 * 1024, int(vmem_need * 5) // 4))

    # ---- cost estimate including grid re-reads of x (grid_h x) and W (grid_m x) ----
    cost = pl.CostEstimate(
        flops=2 * m * k_pad * hidden_dim,
        transcendentals=0,
        bytes_accessed=(
            op_itemsize * (grid_h * m * k_pad + grid_m * k_pad * hidden_dim)
            + out_itemsize * m * hidden_dim
            + b_itemsize * hidden_dim
        ),
    )

    out2d = pl.pallas_call(
        kernel,
        out_shape=jax.ShapeDtypeStruct((m, hidden_dim), out_dtype),
        grid_spec=pltpu.PrefetchScalarGridSpec(
            num_scalar_prefetch=0,
            grid=grid,
            in_specs=[
                pl.BlockSpec((tm, tk), lambda i, j, k: (i, k)),
                pl.BlockSpec((tk, tn), lambda i, j, k: (k, j)),
                pl.BlockSpec((1, tn), lambda i, j, k: (0, j)),
            ],
            out_specs=pl.BlockSpec((tm, tn), lambda i, j, k: (i, j)),
            scratch_shapes=scratch_shapes,
        ),
        compiler_params=pltpu.CompilerParams(
            dimension_semantics=("parallel", "parallel", "arbitrary"),
            vmem_limit_bytes=vmem_limit,
        ),
        cost_estimate=cost,
    )(x2d, w2d, b2d)

    return out2d.reshape(*lead, hidden_dim)


def init_ffn_params(key, input_dim, output_dim, hidden_dim, dtype=jnp.float32):
    """Deterministic init matching torch.nn.Linear's U(-1/sqrt(fan_in), 1/sqrt(fan_in))."""
    k1, k2, k3, k4 = jax.random.split(key, 4)
    bound1 = 1.0 / jnp.sqrt(jnp.array(input_dim, dtype))
    w1 = jax.random.uniform(k1, (input_dim, hidden_dim), dtype, -bound1, bound1)
    b1 = jax.random.uniform(k2, (hidden_dim,), dtype, -bound1, bound1)
    # linear2 params exist in the torch module but are unused in forward; kept for parity.
    bound2 = 1.0 / jnp.sqrt(jnp.array(hidden_dim, dtype))
    w2 = jax.random.uniform(k3, (hidden_dim, output_dim), dtype, -bound2, bound2)
    b2 = jax.random.uniform(k4, (output_dim,), dtype, -bound2, bound2)
    return {"w1": w1, "b1": b1, "w2": w2, "b2": b2}


if __name__ == "__main__":
    input_dim, output_dim, hidden_dim = 32, 16, 64
    batch, seq = 2, 8

    key = jax.random.PRNGKey(0)
    kx, kp = jax.random.split(key)
    x = jax.random.normal(kx, (batch, seq, input_dim), jnp.float32)
    params = init_ffn_params(kp, input_dim, output_dim, hidden_dim)

    out = ffn_forward(x, params["w1"], params["b1"])
    out = jax.block_until_ready(out)

    # Reference check against plain JAX (same math as torch's linear1(x)).
    ref = x @ params["w1"] + params["b1"]
    assert out.shape == (batch, seq, hidden_dim)
    assert jnp.allclose(out, ref, atol=1e-5, rtol=1e-5)

    print("KERNEL_OK")
</pallas_src>

<mosaic_0001>
module attributes {stable_mosaic.version = 11 : i64} {
  func.func @_linear_kernel_accum_out(%arg0: i32, %arg1: i32, %arg2: i32, %arg3: memref<16x128xf32, #tpu.memory_space<vmem>>, %arg4: memref<128x128xf32, #tpu.memory_space<vmem>>, %arg5: memref<1x128xf32, #tpu.memory_space<vmem>>, %arg6: memref<16x128xf32, #tpu.memory_space<vmem>>) attributes {dimension_semantics = [#tpu.dimension_semantics<parallel>, #tpu.dimension_semantics<parallel>, #tpu.dimension_semantics<arbitrary>], iteration_bounds = array<i64: 1, 1, 1>, scalar_prefetch = 0 : i64, scratch_operands = 0 : i64, tpu.core_type = #tpu.core_type<tc>, window_params = [{transform_indices = @transform_0, window_bounds = array<i64: 16, 128>}, {transform_indices = @transform_1, window_bounds = array<i64: 128, 128>}, {transform_indices = @transform_2, window_bounds = array<i64: 1, 128>}, {transform_indices = @transform_3, window_bounds = array<i64: 16, 128>}]} {
    %c0_i32 = arith.constant 0 : i32
    %0 = arith.cmpi eq, %arg2, %c0_i32 : i32
    %1 = arith.extui %0 : i1 to i32
    %c0_i32_0 = arith.constant 0 : i32
    %2 = arith.cmpi ne, %1, %c0_i32_0 : i32
    scf.if %2 {
      %cst_10 = arith.constant 0.000000e+00 : f32
      %12 = vector.broadcast %cst_10 : f32 to vector<16x128xf32>
      %c0_11 = arith.constant 0 : index
      %c0_12 = arith.constant 0 : index
      %13 = vector.load %arg6[%c0_11, %c0_12] : memref<16x128xf32, #tpu.memory_space<vmem>>, vector<16x128xf32>
      tpu.vector_store %arg6[%c0_11, %c0_12], %12 {strides = array<i32>} : memref<16x128xf32, #tpu.memory_space<vmem>>, vector<16x128xf32>,
    } else {
    }
    %c0 = arith.constant 0 : index
    %c0_1 = arith.constant 0 : index
    %3 = vector.load %arg6[%c0, %c0_1] : memref<16x128xf32, #tpu.memory_space<vmem>>, vector<16x128xf32>
    %c0_2 = arith.constant 0 : index
    %c0_3 = arith.constant 0 : index
    %4 = vector.load %arg3[%c0_2, %c0_3] : memref<16x128xf32, #tpu.memory_space<vmem>>, vector<16x128xf32>
    %c0_4 = arith.constant 0 : index
    %c0_5 = arith.constant 0 : index
    %5 = vector.load %arg4[%c0_4, %c0_5] : memref<128x128xf32, #tpu.memory_space<vmem>>, vector<128x128xf32>
    %cst = arith.constant dense<0.000000e+00> : vector<16x128xf32>
    %6 = tpu.matmul %4, %5, %cst {dimension_numbers = #tpu.dot_dimension_numbers<[1], [0], [0], [1], [0, 0, 1, 1], [], []>} : vector<16x128xf32>, vector<128x128xf32>, vector<16x128xf32> -> vector<16x128xf32>
    %7 = arith.addf %3, %6 : vector<16x128xf32>
    %c0_6 = arith.constant 0 : index
    %c0_7 = arith.constant 0 : index
    %8 = vector.load %arg6[%c0_6, %c0_7] : memref<16x128xf32, #tpu.memory_space<vmem>>, vector<16x128xf32>
    tpu.vector_store %arg6[%c0_6, %c0_7], %7 {strides = array<i32>} : memref<16x128xf32, #tpu.memory_space<vmem>>, vector<16x128xf32>,
    %c0_i32_8 = arith.constant 0 : i32
    %9 = arith.cmpi eq, %arg2, %c0_i32_8 : i32
    %10 = arith.extui %9 : i1 to i32
    %c0_i32_9 = arith.constant 0 : i32
    %11 = arith.cmpi ne, %10, %c0_i32_9 : i32
    scf.if %11 {
      %c0_10 = arith.constant 0 : index
      %c0_11 = arith.constant 0 : index
      %12 = vector.load %arg6[%c0_10, %c0_11] : memref<16x128xf32, #tpu.memory_space<vmem>>, vector<16x128xf32>
      %c0_12 = arith.constant 0 : index
      %c0_13 = arith.constant 0 : index
      %13 = vector.load %arg5[%c0_12, %c0_13] : memref<1x128xf32, #tpu.memory_space<vmem>>, vector<1x128xf32>
      %14 = vector.broadcast %13 : vector<1x128xf32> to vector<16x128xf32>
      %15 = arith.addf %12, %14 : vector<16x128xf32>
      %c0_14 = arith.constant 0 : index
      %c0_15 = arith.constant 0 : index
      %16 = vector.load %arg6[%c0_14, %c0_15] : memref<16x128xf32, #tpu.memory_space<vmem>>, vector<16x128xf32>
      tpu.vector_store %arg6[%c0_14, %c0_15], %15 {strides = array<i32>} : memref<16x128xf32, #tpu.memory_space<vmem>>, vector<16x128xf32>,
    } else {
    }
    return
  }
  func.func @transform_0(%arg0: i32, %arg1: i32, %arg2: i32) -> (i32, i32) {
    %c0_i32 = arith.constant 0 : i32
    return %arg0, %arg2 : i32, i32
  }
  func.func @transform_1(%arg0: i32, %arg1: i32, %arg2: i32) -> (i32, i32) {
    %c0_i32 = arith.constant 0 : i32
    return %arg2, %arg1 : i32, i32
  }
  func.func @transform_2(%arg0: i32, %arg1: i32, %arg2: i32) -> (i32, i32) {
    %c0_i32 = arith.constant 0 : i32
    %c0_i32_0 = arith.constant 0 : i32
    return %c0_i32, %arg1 : i32, i32
  }
  func.func @transform_3(%arg0: i32, %arg1: i32, %arg2: i32) -> (i32, i32) {
    %c0_i32 = arith.constant 0 : i32
    return %arg0, %arg1 : i32, i32
  }
}

</mosaic_0001>

<bundles_post_ra>
// kernel: tpu_custom_call.1
= control target key start
LH: loop header
LB: loop body
LE: loop exit
PB: predicated region body
PF: predicated region fallthrough
CT: control target
= control target key end

     0   :  { %s358_s0 = inlined_call_operand.vmem [shape: f32[16,128], index: 0, kind: input, shape index: {}]   ;;  %s359_s1 = inlined_call_operand.vmem [shape: f32[128,64], index: 1, kind: input, shape index: {}]   ;;  %s360_s2 = inlined_call_operand.vmem [shape: f32[1,64], index: 2, kind: input, shape index: {}]   ;;  %s361_s3 = inlined_call_operand.hbm [shape: f32[16,64], index: 3, kind: output, shape index: {}]  }
   0x1   :  { %v25_v0 = vld [vmem:[%s359_s1] sm:$0xff]  ;;  %v26_v1 = vld [vmem:[%s359_s1 + $0x8] sm:$0xff]  ;;  %v27_v2 = vld [vmem:[%s359_s1 + $0x10] sm:$0xff] }
   0x2   :  { %v206_v3 = vpack.c.bf16 %v26_v1, %v25_v0  ;;  %v28_v4 = vld [vmem:[%s359_s1 + $0x18] sm:$0xff]  ;;  %v29_v6 = vld [vmem:[%s359_s1 + $0x20] sm:$0xff]  ;;  %v30_v7 = vld [vmem:[%s359_s1 + $0x28] sm:$0xff] }
   0x3   :  { %v210_v5 = vpack.c.bf16 %v28_v4, %v27_v2  ;;  %v214_v8 = vpack.c.bf16 %v30_v7, %v29_v6  ;;  %v23_v9 = vld [vmem:[%s358_s0] sm:$0xff]  ;;  %v31_v10 = vld [vmem:[%s359_s1 + $0x30] sm:$0xff]  ;;  %v32_v11 = vld [vmem:[%s359_s1 + $0x38] sm:$0xff] }
   0x4   :  { %207 = vmatprep.subr.bf16.mxu0 %v206_v3  ;;  %203 = vmatprep.mubr.f32.mxu0 %v23_v9 }
   0x5   :  { %209 = vmatpush3.bf16.msra.mxu0 %v206_v3 }
   0x6   :  { %211 = vmatprep.subr.bf16.mxu0 %v210_v5 }
   0x7   :  { %8 = vsyncpa [#allocation3], 0  ;;  %v218_v12 = vpack.c.bf16 %v32_v11, %v31_v10  ;;  %v33_v13 = vld [vmem:[%s359_s1 + $0x40] sm:$0xff]  ;;  %v34_v14 = vld [vmem:[%s359_s1 + $0x48] sm:$0xff]  ;;  %s266_s23 = smov [#allocation2]  }
   0x8   :  { %v222_v15 = vpack.c.bf16 %v34_v14, %v33_v13  ;;  %v35_v16 = vld [vmem:[%s359_s1 + $0x50] sm:$0xff]  ;;  %v36_v17 = vld [vmem:[%s359_s1 + $0x58] sm:$0xff]  ;;  %v37_v19 = vld [vmem:[%s359_s1 + $0x60] sm:$0xff]  ;;  %s141_s24 = sshll.u32 %s266_s23, 4  ;;  %s142_s24 = int_to_ptr.vmem [resolvable:$true] %s141_s24 }
   0x9   :  { %213 = vmatpush3.bf16.msra.mxu0 %v210_v5  ;;  %v226_v18 = vpack.c.bf16 %v36_v17, %v35_v16  ;;  %v38_v20 = vld [vmem:[%s359_s1 + $0x68] sm:$0xff]  ;;  %v39_v22 = vld [vmem:[%s359_s1 + $0x70] sm:$0xff]  ;;  %v40_v23 = vld [vmem:[%s359_s1 + $0x78] sm:$0xff]  ;;  %s242_s1 = scalar_lea.vmem %s142_s24, 256  ;;  %p247_p1 = scmp.lt.s32.totalorder %s142_s24, %s142_s24 }
   0xa   :  { %215 = vmatprep.subr.bf16.mxu0 %v214_v8  ;;  %v230_v21 = vpack.c.bf16 %v38_v20, %v37_v19  ;;  %v234_v24 = vpack.c.bf16 %v40_v23, %v39_v22  ;;  %v24_v25 = vld [vmem:[%s358_s0 + $0x8] sm:$0xff]  ;;  %v152_v27 = vld [vmem:[%s360_s2] ss:$0 sm:$0xff]  ;;  %p243_p0 = scmp.ne.s32.totalorder %s142_s24, %s242_s1  ;;  %p248_p2 = scmp.lt.s32.totalorder %s242_s1, %s242_s1 }
   0xc   :  { %p249_p3 = por %p248_p2, %p247_p1 }
   0xd   :  { %217 = vmatpush3.bf16.msra.mxu0 %v214_v8 }
   0xe   :  { %219 = vmatprep.subr.bf16.mxu0 %v218_v12  ;;  %p250_p4 = pnand %p249_p3, %p243_p0 }
  0x11   :  { %221 = vmatpush3.bf16.msra.mxu0 %v218_v12 }
  0x12   :  { %223 = vmatprep.subr.bf16.mxu0 %v222_v15 }
  0x15   :  { %225 = vmatpush3.bf16.msra.mxu0 %v222_v15 }
  0x16   :  { %227 = vmatprep.subr.bf16.mxu0 %v226_v18 }
  0x19   :  { %229 = vmatpush3.bf16.msra.mxu0 %v226_v18 }
  0x1a   :  { %231 = vmatprep.subr.bf16.mxu0 %v230_v21 }
  0x1d   :  { %233 = vmatpush3.bf16.msra.mxu0 %v230_v21 }
  0x1e   :  { %235 = vmatprep.subr.bf16.mxu0 %v234_v24 }
  0x21   :  { %237 = vmatpush3.bf16.msra.mxu0 %v234_v24 }
  0x24   :  { %204 = vmatmul.mubr.f32.vlgmr.msra.gmra.mrb[0].mxu0 %v24_v25 }
  0xf7   :  { %v205_v26 = vpop.f32.mrb[0].mxu0 }
  0xf8   :  { %v107_v28 = vpop.f32.mrb[1].mxu0  ;;  %v133_v29 = vadd.f32 %v205_v26, %v152_v27 }
  0xf9   :  { %v132_v30 = vadd.f32 %v152_v27, %v107_v28 }
  0xfa   :  { %135 = vst [vmem:[#allocation2 + $0x8] sm:$0xff] %v133_v29 }
  0xfb   :  { %134 = vst [vmem:[#allocation2] sm:$0xff] %v132_v30 }
  0xfc   :  { %253 = shalt.err (!%p250_p4)
}
  0xfd   :  { %s254_s26 = scalar_lea.hbm %s361_s3, 256 }
  0xfe   :  { %p255_p5 = scmp.ne.s32.totalorder %s361_s3, %s254_s26  ;;  %p258_p6 = scmp.lt.u32.totalorder %s254_s26, %s361_s3 }
 0x100   :  { %p260_p7 = pnand %p258_p6, %p255_p5 }
 0x102   :  { %263 = shalt.err (!%p260_p7)
}
 0x103   :  { %s267_s30 = smov 128   ;;  %s268_s4 = smov 8  }
 0x104   :  { %147 = dma.vmem_to_hbm [thread:$0]  %s142_s24, 256, %s361_s3, [#allocation3], %s267_s30, %s267_s30, %s268_s4  }
 0x105   :  { %264 = dma.done.wait [#allocation3], 256  }
 0x106   :  { %265 = vsyncadd [#allocation3], 4294967040 }
 0x107   :  { %151 = vsyncpa [#allocation3], 1 }

</bundles_post_ra>
